<compile_context>
chip_gen: v7x
topology: tpu7x:2x2x1
jax: 0.10.0
libtpu: 0.0.40
codegen_flags: <defaults>
</compile_context>

<pallas_src>
import functools

import jax
import jax.numpy as jnp
from jax.experimental import pallas as pl
from jax.experimental.pallas import tpu as pltpu


def _rezero_kernel(g_ref, x_ref, o_ref, *, fn):
    # g_ref : (1, 1) scalar gain in SMEM (f32)
    # x_ref : (bm, L) lane-dense tile of the flattened input (native dtype)
    # o_ref : (bm, L) output tile
    y = x_ref[...]
    if fn is not None:                 # fused elementwise wrapped sub-module
        y = fn(y)
    g = g_ref[0, 0].astype(y.dtype)    # compute in native dtype (bf16 stays bf16)
    o_ref[...] = (y * g).astype(o_ref.dtype)


def _sublane_multiple(dtype):
    # Native sublane packing: 8 for 4-byte, 16 for 2-byte (bf16), 32 for 1-byte.
    itemsize = jnp.dtype(dtype).itemsize
    return max(8, 32 // itemsize)


def _round_up(a, b):
    return ((a + b - 1) // b) * b


def _pick_lane(total, cap):
    """Largest multiple of 128 that is <= cap and exactly divides `total`."""
    start = min(cap, total)
    start -= start % 128
    for lane in range(start, 0, -128):
        if total % lane == 0:
            return lane
    return None


def rezero_forward(x, g, fn=None, *, lane_cap=2048, max_block_rows=1024):
    """Rezero forward: fn(x) * g, fused into a single Pallas TPU kernel.

    x  : float array of any shape
    g  : scalar (or shape-(1,)) learnable gain (PyTorch init: 0)
    fn : optional ELEMENTWISE JAX function fused inside the kernel.
         For a non-elementwise wrapped module, apply it first and pass fn=None.
    """
    orig_shape = x.shape
    total = x.size
    sm = _sublane_multiple(x.dtype)

    L = _pick_lane(total, lane_cap)
    needs_pad = L is None
    if needs_pad:
        # TODO(synk): handle ragged tails with a masked last tile instead of a
        # full-array pad/slice round trip (only hit when total % 128 != 0).
        L = 128
        rows = pl.cdiv(total, L)
        flat = jnp.pad(jnp.ravel(x), (0, rows * L - total))
    else:
        rows = total // L
        flat = jnp.ravel(x)            # pure metadata change, no HBM traffic
    x2 = flat.reshape(rows, L)

    if rows <= sm:
        bm = rows                       # single block equal to the full dim
    else:
        # Keep >=2 grid steps (v7x dual TensorCore) while tiles stay large;
        # bm is a multiple of the sublane packing, last block may be partial.
        bm = min(max_block_rows, _round_up(pl.cdiv(rows, 2), sm))
    grid = (pl.cdiv(rows, bm),)

    g2 = jnp.asarray(g, dtype=jnp.float32).reshape(1, 1)

    out2 = pl.pallas_call(
        functools.partial(_rezero_kernel, fn=fn),
        out_shape=jax.ShapeDtypeStruct((rows, L), x.dtype),
        grid=grid,
        in_specs=[
            pl.BlockSpec(memory_space=pltpu.MemorySpace.SMEM),   # g (1,1) scalar
            pl.BlockSpec((bm, L), lambda i: (i, 0)),             # x row tile
        ],
        out_specs=pl.BlockSpec((bm, L), lambda i: (i, 0)),
        compiler_params=pltpu.CompilerParams(
            dimension_semantics=("parallel",),
            vmem_limit_bytes=48 * 1024 * 1024),
    )(g2, x2)

    if needs_pad:
        return out2.reshape(-1)[:total].reshape(orig_shape)
    return out2.reshape(orig_shape)


if __name__ == "__main__":
    key = jax.random.PRNGKey(0)
    kx, kg, ko = jax.random.split(key, 3)

    # Shapes consistent with the denoising-net usage: NCHW feature map.
    x = jax.random.normal(kx, (2, 4, 16, 16), jnp.float32)

    # PyTorch initializes g to zero; also test a nonzero g so the check is
    # not trivially all-zeros.
    g_zero = jnp.zeros((1,), jnp.float32)
    g_rand = 0.3 + 0.1 * jax.random.normal(kg, (1,), jnp.float32)

    fn = jnp.tanh   # example elementwise wrapped sub-module, fused in-kernel

    out0 = jax.block_until_ready(rezero_forward(x, g_zero, fn))
    out1 = jax.block_until_ready(rezero_forward(x, g_rand, fn))

    ref0 = fn(x) * g_zero          # pure-JAX reference of Rezero.forward
    ref1 = fn(x) * g_rand

    assert out0.shape == x.shape, out0.shape
    assert out1.shape == x.shape, out1.shape
    assert jnp.allclose(out0, ref0, atol=1e-5, rtol=1e-5), (
        float(jnp.max(jnp.abs(out0 - ref0))))
    assert jnp.allclose(out1, ref1, atol=1e-5, rtol=1e-5), (
        float(jnp.max(jnp.abs(out1 - ref1))))

    # Exercise the ragged-tail fallback path (total not a multiple of 128).
    x_odd = jax.random.normal(ko, (3, 5, 7), jnp.float32)
    out_odd = jax.block_until_ready(rezero_forward(x_odd, g_rand, fn))
    ref_odd = fn(x_odd) * g_rand
    assert out_odd.shape == x_odd.shape, out_odd.shape
    assert jnp.allclose(out_odd, ref_odd, atol=1e-5, rtol=1e-5), (
        float(jnp.max(jnp.abs(out_odd - ref_odd))))

    print("KERNEL_OK")
</pallas_src>

<mosaic_0001>
module attributes {stable_mosaic.version = 11 : i64} {
  func.func @_rezero_kernel(%arg0: i32, %arg1: memref<1x1xf32, #tpu.memory_space<smem>>, %arg2: memref<1x2048xf32, #tpu.memory_space<vmem>>, %arg3: memref<1x2048xf32, #tpu.memory_space<vmem>>) attributes {dimension_semantics = [#tpu.dimension_semantics<parallel>], iteration_bounds = array<i64: 1>, scalar_prefetch = 0 : i64, scratch_operands = 0 : i64, tpu.core_type = #tpu.core_type<tc>, window_params = [{transform_indices = @transform_0, window_bounds = array<i64: 1, 1>}, {transform_indices = @transform_1, window_bounds = array<i64: 1, 2048>}, {transform_indices = @transform_2, window_bounds = array<i64: 1, 2048>}]} {
    %c0 = arith.constant 0 : index
    %c0_0 = arith.constant 0 : index
    %0 = vector.load %arg2[%c0, %c0_0] : memref<1x2048xf32, #tpu.memory_space<vmem>>, vector<1x2048xf32>
    %1 = math.tanh %0 : vector<1x2048xf32>
    %c0_1 = arith.constant 0 : index
    %c0_2 = arith.constant 0 : index
    %2 = memref.load %arg1[%c0_1, %c0_2] : memref<1x1xf32, #tpu.memory_space<smem>>
    %3 = vector.broadcast %2 : f32 to vector<1x2048xf32>
    %4 = arith.mulf %1, %3 : vector<1x2048xf32>
    %c0_3 = arith.constant 0 : index
    %c0_4 = arith.constant 0 : index
    %5 = vector.load %arg3[%c0_3, %c0_4] : memref<1x2048xf32, #tpu.memory_space<vmem>>, vector<1x2048xf32>
    tpu.vector_store %arg3[%c0_3, %c0_4], %4 {strides = array<i32>} : memref<1x2048xf32, #tpu.memory_space<vmem>>, vector<1x2048xf32>,
    return
  }
  func.func @transform_0(%arg0: i32) -> (i32, i32) {
    %c0_i32 = arith.constant 0 : i32
    %c0_i32_0 = arith.constant 0 : i32
    %c0_i32_1 = arith.constant 0 : i32
    return %c0_i32, %c0_i32_0 : i32, i32
  }
  func.func @transform_1(%arg0: i32) -> (i32, i32) {
    %c0_i32 = arith.constant 0 : i32
    %c0_i32_0 = arith.constant 0 : i32
    return %arg0, %c0_i32 : i32, i32
  }
  func.func @transform_2(%arg0: i32) -> (i32, i32) {
    %c0_i32 = arith.constant 0 : i32
    %c0_i32_0 = arith.constant 0 : i32
    return %arg0, %c0_i32 : i32, i32
  }
}

</mosaic_0001>

<bundles_post_ra>
// kernel: tpu_custom_call.1
= control target key start
LH: loop header
LB: loop body
LE: loop exit
PB: predicated region body
PF: predicated region fallthrough
CT: control target
= control target key end

     0   :  { %8 = vsyncpa [#allocation4], 0  ;;  %s148_s0 = inlined_call_operand.<no memory space> [shape: f32[1,1], index: 0, kind: input, shape index: {}]   ;;  %s149_s1 = inlined_call_operand.hbm [shape: f32[1,2048], index: 1, kind: input, shape index: {}]   ;;  %s150_s2 = inlined_call_operand.hbm [shape: f32[1,2048], index: 2, kind: output, shape index: {}]  }
   0x1   :  { %9 = vsyncpa [#allocation5], 0  ;;  %s104_s9 = smov [#allocation3]   ;;  %s56_s13 = scalar_lea.hbm %s149_s1, 256 }
   0x2   :  { %s18_s10 = sshll.u32 %s104_s9, 4  ;;  %p57_p0 = scmp.ne.s32.totalorder %s149_s1, %s56_s13  ;;  %s19_s10 = int_to_ptr.vmem [resolvable:$true] %s18_s10 }
   0x3   :  { %p60_p1 = scmp.lt.u32.totalorder %s56_s13, %s149_s1 }
   0x5   :  { %p62_p2 = pnand %p60_p1, %p57_p0 }
   0x7   :  { %65 = shalt.err (!%p62_p2)
}
   0x8   :  { %s66_s18 = scalar_lea.vmem %s19_s10, 256  ;;  %p71_p4 = scmp.lt.s32.totalorder %s19_s10, %s19_s10 }
   0x9   :  { %p67_p3 = scmp.ne.s32.totalorder %s19_s10, %s66_s18  ;;  %p72_p5 = scmp.lt.s32.totalorder %s66_s18, %s66_s18 }
   0xb   :  { %p73_p6 = por %p72_p5, %p71_p4 }
   0xd   :  { %p74_p7 = pnand %p73_p6, %p67_p3 }
   0xf   :  { %77 = shalt.err (!%p74_p7)
}
  0x10   :  { %21 = dma.hbm_to_vmem [thread:$0]  %s149_s1, 256, %s19_s10, [#allocation4]  }
  0x11   :  { %100 = dma.done.wait [#allocation4], 256  }
  0x12   :  { %101 = vsyncadd [#allocation4], 4294967040  ;;  %v25_v0 = vld [vmem:[#allocation3] sm:$0xff]  ;;  %v26_v1 = vld [vmem:[#allocation3 + $0x8] sm:$0xff]  ;;  %v30_v2 = vstv %s148_s0  ;;  %s105_s23 = smov [#allocation6]  }
  0x13   :  { %52 = vtanh.f32 %v25_v0  ;;  %s41_s24 = sshll.u32 %s105_s23, 4  ;;  %s42_s24 = int_to_ptr.vmem [resolvable:$true] %s41_s24 }
  0x14   :  { %54 = vtanh.f32 %v26_v1  ;;  %s78_s1 = scalar_lea.vmem %s42_s24, 256  ;;  %p83_p9 = scmp.lt.s32.totalorder %s42_s24, %s42_s24 }
  0x15   :  { %p79_p8 = scmp.ne.s32.totalorder %s42_s24, %s78_s1  ;;  %p84_p10 = scmp.lt.s32.totalorder %s78_s1, %s78_s1 }
  0x17   :  { %p85_p11 = por %p84_p10, %p83_p9 }
  0x19   :  { %p86_p12 = pnand %p85_p11, %p79_p8 }
  0x1d   :  { %v53_v3 = vpop.eup %52 }
  0x1e   :  { %v55_v4 = vpop.eup %54  ;;  %v31_v5 = vmul.f32 %v53_v3, %v30_v2 }
  0x1f   :  { %v32_v6 = vmul.f32 %v55_v4, %v30_v2 }
  0x20   :  { %33 = vst [vmem:[#allocation6] sm:$0xff] %v31_v5 }
  0x21   :  { %34 = vst [vmem:[#allocation6 + $0x8] sm:$0xff] %v32_v6 }
  0x22   :  { %89 = shalt.err (!%p86_p12)
}
  0x23   :  { %s90_s0 = scalar_lea.hbm %s150_s2, 256 }
  0x24   :  { %p91_p13 = scmp.ne.s32.totalorder %s150_s2, %s90_s0  ;;  %p94_p0 = scmp.lt.u32.totalorder %s90_s0, %s150_s2 }
  0x26   :  { %p96_p1 = pnand %p94_p0, %p91_p13 }
  0x28   :  { %99 = shalt.err (!%p96_p1)
}
  0x29   :  { %44 = dma.vmem_to_hbm [thread:$0]  %s42_s24, 256, %s150_s2, [#allocation5]  }
  0x2a   :  { %102 = dma.done.wait [#allocation5], 256  }
  0x2b   :  { %103 = vsyncadd [#allocation5], 4294967040 }
  0x2c   :  { %48 = vsyncpa [#allocation4], 1 }
  0x2d   :  { %49 = vsyncpa [#allocation5], 1 }

</bundles_post_ra>
